<compile_context>
chip_gen: v7x
topology: tpu7x:2x2x1
jax: 0.10.0
libtpu: 0.0.40
codegen_flags: <defaults>
</compile_context>

<pallas_src>
import functools

import jax
import jax.numpy as jnp
from jax.experimental import pallas as pl
from jax.experimental.pallas import tpu as pltpu

# Keep double-buffered in+out tiles well under every generation's scoped VMEM
# (v5e default 16 MiB -> raised explicitly; v6e/v7x default 32 MiB; v7x has
# only 64 MiB physical VMEM per TensorCore).
_VMEM_LIMIT_BYTES = 32 * 1024 * 1024
# ~4 MiB of f32 per I/O tile -> <= ~16 MiB resident with double-buffered in+out.
_TILE_BUDGET_ELEMS = 1 << 20


def _ln_channels_last_kernel(x_ref, w_ref, b_ref, o_ref, *, eps, inv_c):
    # x_ref: (TR, C) tile; w_ref / b_ref: (1, C). Reduce over lanes (C).
    x = x_ref[...].astype(jnp.float32)
    s1 = jnp.sum(x, axis=-1, keepdims=True)
    s2 = jnp.sum(x * x, axis=-1, keepdims=True)
    mean = s1 * inv_c
    var = s2 * inv_c - mean * mean
    inv = jax.lax.rsqrt(var + eps)
    y = (x - mean) * inv
    y = y * w_ref[...].astype(jnp.float32) + b_ref[...].astype(jnp.float32)
    o_ref[...] = y.astype(o_ref.dtype)


def _ln_channels_first_kernel(x_ref, w_ref, b_ref, o_ref, *, eps, inv_c):
    # x_ref: (1, C, THW) tile; w_ref / b_ref: (1, C, 1).
    # Reduce over sublanes (C); H*W stays dense on lanes.
    x = x_ref[...].astype(jnp.float32)
    s1 = jnp.sum(x, axis=1, keepdims=True)
    s2 = jnp.sum(x * x, axis=1, keepdims=True)
    mean = s1 * inv_c
    var = s2 * inv_c - mean * mean
    inv = jax.lax.rsqrt(var + eps)
    y = (x - mean) * inv
    y = y * w_ref[...].astype(jnp.float32) + b_ref[...].astype(jnp.float32)
    o_ref[...] = y.astype(o_ref.dtype)


def _pick_row_tile(rows, c):
    """Row (sublane-axis) tile for the channels_last kernel."""
    max_rows = max(8, (_TILE_BUDGET_ELEMS // max(c, 1)) // 8 * 8)
    block = max(8, (min(rows, max_rows) // 8) * 8)
    if block >= rows and rows > 8:
        # Guarantee >=2 grid steps: keeps double-buffered pipelining alive and
        # feeds both TensorCores on v7x.
        block = max(8, ((rows + 1) // 2 + 7) // 8 * 8)
        block = min(block, max_rows)
    return block


def _pick_hw_tile(hw, c, n_batch):
    """Spatial (lane-axis) tile for the channels_first kernel."""
    max_t = max(128, (_TILE_BUDGET_ELEMS // max(c, 1)) // 128 * 128)
    if hw <= max_t:
        if n_batch >= 2 or hw < 256:
            return hw  # full spatial extent in one lane-dense tile
        # Single batch element: split spatial so the grid has >=2 steps.
        return max(128, (-(-hw // 2) // 128) * 128)
    return max_t


def _ln_channels_last_2d(x2d, weight, bias, eps):
    rows, c = x2d.shape
    block_rows = _pick_row_tile(rows, c)
    grid = (pl.cdiv(rows, block_rows),)

    w2d = weight.reshape(1, c)
    b2d = bias.reshape(1, c)

    kernel = functools.partial(_ln_channels_last_kernel, eps=eps, inv_c=1.0 / c)
    return pl.pallas_call(
        kernel,
        out_shape=jax.ShapeDtypeStruct((rows, c), x2d.dtype),
        grid=grid,
        in_specs=[
            pl.BlockSpec((block_rows, c), lambda i: (i, 0)),
            pl.BlockSpec((1, c), lambda i: (0, 0)),
            pl.BlockSpec((1, c), lambda i: (0, 0)),
        ],
        out_specs=pl.BlockSpec((block_rows, c), lambda i: (i, 0)),
        compiler_params=pltpu.CompilerParams(
            dimension_semantics=("parallel",),
            vmem_limit_bytes=_VMEM_LIMIT_BYTES,
        ),
    )(x2d, w2d, b2d)


def _ln_channels_first_3d(x3d, weight, bias, eps):
    n, c, hw = x3d.shape
    tile_hw = _pick_hw_tile(hw, c, n)
    grid = (n, pl.cdiv(hw, tile_hw))

    w3d = weight.reshape(1, c, 1)
    b3d = bias.reshape(1, c, 1)

    kernel = functools.partial(_ln_channels_first_kernel, eps=eps, inv_c=1.0 / c)
    return pl.pallas_call(
        kernel,
        out_shape=jax.ShapeDtypeStruct((n, c, hw), x3d.dtype),
        grid=grid,
        in_specs=[
            pl.BlockSpec((1, c, tile_hw), lambda i, j: (i, 0, j)),
            pl.BlockSpec((1, c, 1), lambda i, j: (0, 0, 0)),
            pl.BlockSpec((1, c, 1), lambda i, j: (0, 0, 0)),
        ],
        out_specs=pl.BlockSpec((1, c, tile_hw), lambda i, j: (i, 0, j)),
        compiler_params=pltpu.CompilerParams(
            dimension_semantics=("parallel", "parallel"),
            vmem_limit_bytes=_VMEM_LIMIT_BYTES,
        ),
    )(x3d, w3d, b3d)


def layer_norm(x, weight, bias, eps=1e-6, data_format="channels_last"):
    """ConvNeXt LayerNorm forward (matches the PyTorch module semantics)."""
    if data_format not in ("channels_last", "channels_first"):
        raise ValueError(f"Unsupported data format: {data_format}")

    if data_format == "channels_first":
        # Native NCHW kernel over an (N, C, H*W) view — the reshape is a free
        # contiguous collapse, no HBM transposes.
        n, c = x.shape[0], x.shape[1]
        hw = 1
        for s in x.shape[2:]:
            hw *= s
        y3d = _ln_channels_first_3d(x.reshape(n, c, hw), weight, bias, eps)
        return y3d.reshape(x.shape)
    else:
        c = x.shape[-1]
        y2d = _ln_channels_last_2d(x.reshape(-1, c), weight, bias, eps)
        return y2d.reshape(x.shape)


def _reference(x, weight, bias, eps, data_format):
    xf = x.astype(jnp.float32)
    if data_format == "channels_first":
        axis = 1
        w = weight[:, None, None]
        b = bias[:, None, None]
    else:
        axis = -1
        w = weight
        b = bias
    mean = jnp.mean(xf, axis=axis, keepdims=True)
    var = jnp.mean((xf - mean) ** 2, axis=axis, keepdims=True)
    y = (xf - mean) / jnp.sqrt(var + eps)
    return (w * y + b).astype(x.dtype)


if __name__ == "__main__":
    key = jax.random.PRNGKey(0)
    kx, kw, kb = jax.random.split(key, 3)

    N, C, H, W = 2, 4, 16, 16
    eps = 1e-6

    # Module __init__ uses torch.zeros((C,)); use nontrivial deterministic
    # values so the affine path is actually exercised.
    weight = jax.random.normal(kw, (C,), dtype=jnp.float32)
    bias = jax.random.normal(kb, (C,), dtype=jnp.float32)

    # channels_first input (PyTorch NCHW)
    x_nchw = jax.random.normal(kx, (N, C, H, W), dtype=jnp.float32)
    y_cf = layer_norm(x_nchw, weight, bias, eps, data_format="channels_first")
    y_cf = jax.block_until_ready(y_cf)
    ref_cf = _reference(x_nchw, weight, bias, eps, "channels_first")
    assert jnp.allclose(y_cf, ref_cf, atol=1e-5, rtol=1e-5), "channels_first mismatch"

    # channels_last input (NHWC)
    x_nhwc = jnp.transpose(x_nchw, (0, 2, 3, 1))
    y_cl = layer_norm(x_nhwc, weight, bias, eps, data_format="channels_last")
    y_cl = jax.block_until_ready(y_cl)
    ref_cl = _reference(x_nhwc, weight, bias, eps, "channels_last")
    assert jnp.allclose(y_cl, ref_cl, atol=1e-5, rtol=1e-5), "channels_last mismatch"

    print("KERNEL_OK")
</pallas_src>

<mosaic_0001>
module attributes {stable_mosaic.version = 11 : i64} {
  func.func @_ln_channels_first_kernel(%arg0: i32, %arg1: i32, %arg2: memref<1x4x256xf32, #tpu.memory_space<vmem>>, %arg3: memref<1x4x1xf32, #tpu.memory_space<vmem>>, %arg4: memref<1x4x1xf32, #tpu.memory_space<vmem>>, %arg5: memref<1x4x256xf32, #tpu.memory_space<vmem>>) attributes {dimension_semantics = [#tpu.dimension_semantics<parallel>, #tpu.dimension_semantics<parallel>], iteration_bounds = array<i64: 2, 1>, scalar_prefetch = 0 : i64, scratch_operands = 0 : i64, tpu.core_type = #tpu.core_type<tc>, window_params = [{transform_indices = @transform_0, window_bounds = array<i64: 1, 4, 256>}, {pipeline_mode = #tpu.pipeline_mode<synchronous>, transform_indices = @transform_1, window_bounds = array<i64: 1, 4, 1>}, {pipeline_mode = #tpu.pipeline_mode<synchronous>, transform_indices = @transform_2, window_bounds = array<i64: 1, 4, 1>}, {transform_indices = @transform_3, window_bounds = array<i64: 1, 4, 256>}]} {
    %c0 = arith.constant 0 : index
    %c0_0 = arith.constant 0 : index
    %c0_1 = arith.constant 0 : index
    %0 = vector.load %arg2[%c0, %c0_0, %c0_1] : memref<1x4x256xf32, #tpu.memory_space<vmem>>, vector<1x4x256xf32>
    %cst = arith.constant dense<0.000000e+00> : vector<1x256xf32>
    %1 = vector.multi_reduction <add>, %0, %cst [1] : vector<1x4x256xf32> to vector<1x256xf32>
    %2 = vector.shape_cast %1 : vector<1x256xf32> to vector<1x1x256xf32>
    %3 = arith.mulf %0, %0 : vector<1x4x256xf32>
    %cst_2 = arith.constant dense<0.000000e+00> : vector<1x256xf32>
    %4 = vector.multi_reduction <add>, %3, %cst_2 [1] : vector<1x4x256xf32> to vector<1x256xf32>
    %5 = vector.shape_cast %4 : vector<1x256xf32> to vector<1x1x256xf32>
    %cst_3 = arith.constant 2.500000e-01 : f32
    %6 = vector.broadcast %cst_3 : f32 to vector<1x1x256xf32>
    %7 = arith.mulf %2, %6 : vector<1x1x256xf32>
    %cst_4 = arith.constant 2.500000e-01 : f32
    %8 = vector.broadcast %cst_4 : f32 to vector<1x1x256xf32>
    %9 = arith.mulf %5, %8 : vector<1x1x256xf32>
    %10 = arith.mulf %7, %7 : vector<1x1x256xf32>
    %11 = arith.subf %9, %10 : vector<1x1x256xf32>
    %cst_5 = arith.constant 9.99999997E-7 : f32
    %12 = vector.broadcast %cst_5 : f32 to vector<1x1x256xf32>
    %13 = arith.addf %11, %12 : vector<1x1x256xf32>
    %14 = math.rsqrt %13 : vector<1x1x256xf32>
    %15 = vector.broadcast %7 : vector<1x1x256xf32> to vector<1x4x256xf32>
    %16 = arith.subf %0, %15 : vector<1x4x256xf32>
    %17 = vector.broadcast %14 : vector<1x1x256xf32> to vector<1x4x256xf32>
    %18 = arith.mulf %16, %17 : vector<1x4x256xf32>
    %c0_6 = arith.constant 0 : index
    %c0_7 = arith.constant 0 : index
    %c0_8 = arith.constant 0 : index
    %19 = vector.load %arg3[%c0_6, %c0_7, %c0_8] : memref<1x4x1xf32, #tpu.memory_space<vmem>>, vector<1x4x1xf32>
    %20 = vector.broadcast %19 : vector<1x4x1xf32> to vector<1x4x256xf32>
    %21 = arith.mulf %18, %20 : vector<1x4x256xf32>
    %c0_9 = arith.constant 0 : index
    %c0_10 = arith.constant 0 : index
    %c0_11 = arith.constant 0 : index
    %22 = vector.load %arg4[%c0_9, %c0_10, %c0_11] : memref<1x4x1xf32, #tpu.memory_space<vmem>>, vector<1x4x1xf32>
    %23 = vector.broadcast %22 : vector<1x4x1xf32> to vector<1x4x256xf32>
    %24 = arith.addf %21, %23 : vector<1x4x256xf32>
    %c0_12 = arith.constant 0 : index
    %c0_13 = arith.constant 0 : index
    %c0_14 = arith.constant 0 : index
    %25 = vector.load %arg5[%c0_12, %c0_13, %c0_14] : memref<1x4x256xf32, #tpu.memory_space<vmem>>, vector<1x4x256xf32>
    tpu.vector_store %arg5[%c0_12, %c0_13, %c0_14], %24 {strides = array<i32>} : memref<1x4x256xf32, #tpu.memory_space<vmem>>, vector<1x4x256xf32>,
    return
  }
  func.func @transform_0(%arg0: i32, %arg1: i32) -> (i32, i32, i32) {
    %c0_i32 = arith.constant 0 : i32
    %c0_i32_0 = arith.constant 0 : i32
    return %arg0, %c0_i32, %arg1 : i32, i32, i32
  }
  func.func @transform_1(%arg0: i32, %arg1: i32) -> (i32, i32, i32) {
    %c0_i32 = arith.constant 0 : i32
    %c0_i32_0 = arith.constant 0 : i32
    %c0_i32_1 = arith.constant 0 : i32
    %c0_i32_2 = arith.constant 0 : i32
    return %c0_i32, %c0_i32_0, %c0_i32_1 : i32, i32, i32
  }
  func.func @transform_2(%arg0: i32, %arg1: i32) -> (i32, i32, i32) {
    %c0_i32 = arith.constant 0 : i32
    %c0_i32_0 = arith.constant 0 : i32
    %c0_i32_1 = arith.constant 0 : i32
    %c0_i32_2 = arith.constant 0 : i32
    return %c0_i32, %c0_i32_0, %c0_i32_1 : i32, i32, i32
  }
  func.func @transform_3(%arg0: i32, %arg1: i32) -> (i32, i32, i32) {
    %c0_i32 = arith.constant 0 : i32
    %c0_i32_0 = arith.constant 0 : i32
    return %arg0, %c0_i32, %arg1 : i32, i32, i32
  }
}

</mosaic_0001>

<bundles_post_ra>
// kernel: tpu_custom_call.1
= control target key start
LH: loop header
LB: loop body
LE: loop exit
PB: predicated region body
PF: predicated region fallthrough
CT: control target
= control target key end

     0   :  { %8 = vsyncpa [#allocation3], 0  ;;  %s803_s0 = inlined_call_operand.hbm [shape: f32[2,4,256], index: 0, kind: input, shape index: {}]   ;;  %s804_s1 = inlined_call_operand.vmem [shape: f32[1,4,1], index: 1, kind: input, shape index: {}]   ;;  %s805_s2 = inlined_call_operand.vmem [shape: f32[1,4,1], index: 2, kind: input, shape index: {}]   ;;  %s806_s3 = inlined_call_operand.hbm [shape: f32[2,4,256], index: 3, kind: output, shape index: {}]  }
   0x1   :  { %10 = vsyncpa [#allocation3 + $0x1], 0 }
   0x2   :  { %11 = vsyncpa [#allocation4], 0 }
   0x3   :  { %13 = vsyncpa [#allocation4 + $0x1], 0  ;;  %s621_s12 = smov 0   ;;  %s623_s13 = smov 0  }
   0x4   :  { %s625_s14 = smov 0   ;;  %s627_s15 = smov 0  }
   0x5   :  { %s629_s16 = smov 0   ;;  %s631_s17 = smov 0  }
   0x6 LB: > { %s396_s18 = sadd.s32 4294967295, %s595_s17   ;;  %s397_s19 = sadd.s32 4294967294, %s595_s17   ;;  %s595_s17 = sphi %s631_s17, %s19_s17   ;;  %s591_s16 = sphi %s629_s16, %s822_s16   ;;  %s587_s15 = sphi %s627_s15, %s821_s15   ;;  %s583_s14 = sphi %s625_s14, %s820_s14   ;;  %s579_s13 = sphi %s623_s13, %s819_s13   ;;  %s575_s12 = sphi %s621_s12, %s818_s12  }
   0x7   : > { %s31_s20 = sadd.s32 1, %s591_s16  ;;  %s40_s21 = sadd.s32 1, %s583_s14 }
   0x8   : > { %p33_p0 = scmp.ge.s32.totalorder %s31_s20, 2  ;;  %p47_p1 = scmp.ne.s32.totalorder %s583_s14, %s579_s13 }
   0x9   : > { %p48_p2 = scmp.eq.s32.totalorder %s595_s17, 0  ;;  %p53_p3 = scmp.ne.s32.totalorder %s579_s13, %s575_s12 }
   0xa   : > { %s824_s20 = smov (%p33_p0, %s31_s20), 0  ;;  %p54_p5 = scmp.eq.s32.totalorder %s396_s18, 0 }
   0xb   : > { %p662_p4 = por %p48_p2, %p47_p1  ;;  %s35_s23 = ssub.s32 %s591_s16, %s824_s20 }
   0xc   : > { %p121_p6 = scmp.eq.s32.totalorder %s396_s18, 1  ;;  %p38_p7 = scmp.eq.s32.totalorder %s35_s23, 0 }
   0xd   : > { %p668_p8 = por %p54_p5, %p53_p3  ;;  %p127_p10 = scmp.eq.s32.totalorder %s397_s19, 1 }
   0xe   : > { %p672_p9 = por %p121_p6, %p47_p1  ;;  %p425_p13 = scmp.lt.s32.totalorder %s595_s17, 2 }
   0xf   : > { %s677_s26 = scalar_select %p38_p7, %s583_s14, %s40_s21  }
  0x10   : > { %s810_s25 = scalar_select %p672_p9, 1, 0 }
  0x11   : > { %p679_p11 = por %p127_p10, %p53_p3  ;;  %s153_s28 = sand.u32 1, %s583_s14  }
  0x12   : > { %s400_s29 = sshll.u32 %s153_s28, 3  ;;  %s411_s30 = sshll.u32 %s591_s16, 7 }
  0x13   : > { %s811_s27 = scalar_select %p679_p11, 1, 0 }
  0x14   : > { %s690_s6 = scalar_lea.hbm %s803_s0, %s411_s30  ;;  %s157_s7 = scalar_lea.vmem [#allocation2], %s400_s29 }
  0x15   : > { %s167_s8 = sshll.u32 %s157_s7, 4  ;;  %p696_p0 = pnand %p425_p13, %p662_p4  ;;  %s692_s8 = int_to_ptr.vmem [resolvable:$true] %s167_s8 }
  0x16   : > { %s154_s10 = scalar_lea.sflag [#allocation3], %s153_s28  ;;  %s483_s11 = scalar_lea.hbm %s690_s6, 128 }
  0x17   : > { %p484_p3 = scmp.ne.s32.totalorder %s690_s6, %s483_s11  ;;  %p485_p5 = pneg %p696_p0 }
  0x18   : > { %s488_s21 = scalar_lea.hbm %s803_s0, 256  ;;  %p489_p4 = scmp.lt.u32.totalorder %s690_s6, %s803_s0 }
  0x19   : > { %p486_p6 = pnand %p485_p5, %p484_p3  ;;  %p490_p10 = scmp.lt.u32.totalorder %s488_s21, %s483_s11 }
  0x1a   : > { %p492_p12 = scmp.lt.u32.totalorder %s483_s11, %s690_s6 }
  0x1b   : > { %p487_p7 = pneg %p486_p6  ;;  %p491_p13 = por %p490_p10, %p489_p4 }
  0x1d   : > { %p493_p1 = por %p492_p12, %p491_p13 }
  0x1f   : > { %p494_p2 = pnand %p493_p1, %p487_p7 }
  0x21   : > { %497 = shalt.err (!%p494_p2)
}
  0x22   : > { %s498_s28 = scalar_lea.vmem %s692_s8, 128  ;;  %s597_s29 = smov [#allocation2]  }
  0x23   : > { %p499_p3 = scmp.ne.s32.totalorder %s692_s8, %s498_s28  ;;  %s503_s30 = sshll.u32 %s597_s29, 4  ;;  %s504_s30 = int_to_ptr.vmem [resolvable:$false] %s503_s30 }
  0x24   : > { %s505_s4 = scalar_lea.vmem %s504_s30, 256  ;;  %p506_p9 = scmp.lt.s32.totalorder %s692_s8, %s504_s30 }
  0x25   : > { %p501_p6 = pnand %p499_p3, %p485_p5  ;;  %p507_p4 = scmp.lt.s32.totalorder %s505_s4, %s498_s28 }
  0x27   : > { %p502_p11 = pneg %p501_p6  ;;  %p508_p10 = por %p507_p4, %p506_p9 }
  0x29   : > { %p509_p12 = pnand %p508_p10, %p502_p11 }
  0x2b   : > { %512 = shalt.err (!%p509_p12)
}
  0x2c   : > { %420 = dma.hbm_to_vmem [thread:$0]  (!%p696_p0), %s690_s6, 128, %s692_s8, %s154_s10  }
  0x2d   : > { %p813_p1 = scmp.lt.s32.totalorder %s595_s17, 3  ;;  %p814_p2 = scmp.ge.s32.totalorder %s595_s17, 1 }
  0x2f   : > { %p173_p5 = pnand %p814_p2, %p813_p1 }
  0x30   : > { %s732_s5 = sand.u32 (!%p173_p5), 1, %s579_s13  }
  0x31   : > { %176 = sbr.rel (%p173_p5) target bundleno = 209 (0xd1), region = 32  ;;  %s404_s7 = sshll.u32 (!%p173_p5), %s732_s5, 3 }
  0x32   : > { %s179_s11 = scalar_lea.sflag (!%p173_p5), [#allocation3], %s732_s5  ;;  %s182_s9 = scalar_lea.vmem (!%p173_p5), [#allocation2], %s404_s7 }
  0x38   : > { %566 = dma.done.wait (%p668_p8), %s179_s11, 128  }
  0x39   : > { %568 = vsyncadd (%p668_p8), %s179_s11, 4294967168  ;;  %v598_v0 = vmov 0   ;;  %v266_v1 = vld [vmem:[%s804_s1] sm:$0xf]  ;;  %vm211_vm0 = vcmask 1043456   ;;  %v274_v47 = vlaneseq  ;;  %s412_s24 = sshll.u32 %s587_s15, 7 }
  0x3a   : > { %477 = vset.pattern.permute.xlu0 %v598_v0  ;;  %v280_v2 = vld [vmem:[%s805_s2] sm:$0xf]  ;;  %v599_v45 = vmov 839922192   ;;  %s204_s19 = scalar_lea.vmem [#allocation5], %s404_s7  ;;  %s754_s28 = scalar_lea.hbm %s806_s3, %s412_s24 }
  0x3b   : > { %269 = vperm.xlu0 %477, %v266_v1   ;;  %v207_v3 = vld [vmem:[%s182_s9] sm:$0xff]  ;;  %v272_v46 = vunpack.c.l.s4 %v599_v45  ;;  %v275_v50 = vshrl.u32 %v274_v47, 7  ;;  %s312_s21 = sshll.u32 %s204_s19, 4  ;;  %s296_s29 = scalar_lea.sflag [#allocation4], %s732_s5  ;;  %s756_s21 = int_to_ptr.vmem [resolvable:$true] %s312_s21 }
  0x3c   : > { %v209_v4 = vcombine.high %v207_v3, %v207_v3  ;;  %v226_v5 = vmul.f32 %v207_v3, %v207_v3  ;;  %v212_v6 = vsel %vm211_vm0, %v207_v3, 0.0  ;;  %s513_s30 = scalar_lea.vmem %s756_s21, 128  ;;  %p815_p9 = scmp.ne.s32.totalorder %s810_s25, 0 }
  0x3d   : > { %v213_v9 = vrot.slane %v212_v6, 4  ;;  %v273_v49 = vunpack.c.0.s8 %v272_v46  ;;  %p514_p8 = scmp.ne.s32.totalorder %s756_s21, %s513_s30  ;;  %s600_s15 = smov [#allocation5]  }
  0x3e   : > { %v219_v7 = vsel %vm211_vm0, %v209_v4, 0.0  ;;  %v228_v8 = vcombine.high %v226_v5, %v226_v5  ;;  %v230_v11 = vsel %vm211_vm0, %v226_v5, 0.0  ;;  %s517_s4 = sshll.u32 %s600_s15, 4  ;;  %s518_s4 = int_to_ptr.vmem [resolvable:$false] %s517_s4 }
  0x3f   : > { %283 = vperm.xlu0 %477, %v280_v2   ;;  %v220_v10 = vrot.slane %v219_v7, 4  ;;  %v214_v13 = vadd.f32 %v213_v9, %v212_v6  ;;  %v231_v14 = vrot.slane %v230_v11, 4  ;;  %v276_v53 = vsub.s32 %v273_v49, %v275_v50  ;;  %p515_p11 = pnand %p514_p8, %p815_p9  ;;  %s519_s7 = scalar_lea.vmem %s518_s4, 256 }
  0x40   : > { %v237_v12 = vsel %vm211_vm0, %v228_v8, 0.0  ;;  %p520_p7 = scmp.lt.s32.totalorder %s756_s21, %s518_s4  ;;  %p521_p13 = scmp.lt.s32.totalorder %s519_s7, %s513_s30 }
  0x41   : > { %v221_v15 = vadd.f32 %v220_v10, %v219_v7  ;;  %v238_v16 = vrot.slane %v237_v12, 4  ;;  %v215_v17 = vrot.slane %v214_v13, 2  ;;  %v232_v18 = vadd.f32 %v231_v14, %v230_v11  ;;  %p516_p0 = pneg %p515_p11 }
  0x42   : > { %p522_p3 = por %p521_p13, %p520_p7 }
  0x43   : > { %v222_v19 = vrot.slane %v221_v15, 2  ;;  %v239_v20 = vadd.f32 %v238_v16, %v237_v12  ;;  %v216_v21 = vadd.f32 %v215_v17, %v214_v13  ;;  %v233_v22 = vrot.slane %v232_v18, 2 }
  0x44   : > { %p523_p6 = pnand %p522_p3, %p516_p0 }
  0x45   : > { %v223_v23 = vadd.f32 %v222_v19, %v221_v15  ;;  %v240_v24 = vrot.slane %v239_v20, 2  ;;  %v217_v25 = vrot.slane %v216_v21, 1  ;;  %v234_v26 = vadd.f32 %v233_v22, %v232_v18 }
  0x47   : > { %v224_v27 = vrot.slane %v223_v23, 1  ;;  %v241_v28 = vadd.f32 %v240_v24, %v239_v20  ;;  %v218_v29 = vadd.f32 %v217_v25, %v216_v21  ;;  %v235_v30 = vrot.slane %v234_v26, 1 }
  0x49   : > { %v225_v31 = vadd.f32 %v224_v27, %v223_v23  ;;  %v242_v32 = vrot.slane %v241_v28, 1  ;;  %v236_v33 = vadd.f32 %v235_v30, %v234_v26  ;;  %v244_v34 = vmul.f32 0.25, %v218_v29 }
  0x4b   : > { %v243_v35 = vadd.f32 %v242_v32, %v241_v28  ;;  %v245_v36 = vmul.f32 0.25, %v225_v31  ;;  %v246_v37 = vmul.f32 0.25, %v236_v33  ;;  %v248_v38 = vmul.f32 %v244_v34, %v244_v34 }
  0x4d   : > { %v247_v39 = vmul.f32 0.25, %v243_v35  ;;  %v249_v40 = vmul.f32 %v245_v36, %v245_v36  ;;  %v250_v41 = vsub.f32 %v246_v37, %v248_v38  ;;  %v258_v51 = vcombine.low %v244_v34, %v245_v36 }
  0x4f   : > { %v251_v42 = vsub.f32 %v247_v39, %v249_v40  ;;  %v252_v43 = vadd.f32 1e-06, %v250_v41  ;;  %v260_v54 = vsub.f32 %v207_v3, %v258_v51 }
  0x51   : > { %v253_v44 = vadd.f32 1e-06, %v251_v42  ;;  %479 = vrsqrt.f32 %v252_v43 }
  0x53   : > { %481 = vrsqrt.f32 %v253_v44 }
  0x5b   : > { %v480_v48 = vpop.eup %479 }
  0x5d   : > { %v482_v52 = vpop.eup %481 }
  0x5e   : > { %v263_v55 = vcombine.low %v480_v48, %v482_v52 }
  0x60   : > { %v265_v57 = vmul.f32 %v263_v55, %v260_v54 }
  0xba   : > { %v270_v56 = vpop.permute.xlu0 %269 }
  0xbb   : > { %v277_v58 = vrot.slane %v270_v56, %v276_v53 }
  0xbd   : > { %v279_v60 = vmul.f32 %v277_v58, %v265_v57 }
  0xbe   : > { %v284_v59 = vpop.permute.xlu0 %283 }
  0xbf   : > { %v291_v61 = vrot.slane %v284_v59, %v276_v53 }
  0xc1   : > { %v293_v62 = vadd.f32 %v291_v61, %v279_v60 }
  0xc3   : > { %294 = vst [vmem:[%s204_s19] sm:$0xff] %v293_v62 }
  0xc4   : > { %526 = shalt.err (!%p523_p6)
}
  0xc5   : > { %s527_s5 = scalar_lea.hbm %s754_s28, 128  ;;  %s531_s6 = scalar_lea.hbm %s806_s3, 256 }
  0xc6   : > { %p528_p4 = scmp.ne.s32.totalorder %s754_s28, %s527_s5  ;;  %p532_p1 = scmp.lt.u32.totalorder %s754_s28, %s806_s3 }
  0xc7   : > { %p533_p2 = scmp.lt.u32.totalorder %s531_s6, %s527_s5  ;;  %p535_p8 = scmp.lt.u32.totalorder %s527_s5, %s754_s28 }
  0xc8   : > { %p529_p10 = pnand %p528_p4, %p815_p9 }
  0xc9   : > { %p534_p5 = por %p533_p2, %p532_p1 }
  0xca   : > { %p530_p12 = pneg %p529_p10 }
  0xcb   : > { %p536_p11 = por %p535_p8, %p534_p5 }
  0xcd   : > { %p537_p0 = pnand %p536_p11, %p530_p12 }
  0xcf   : > { %540 = shalt.err (!%p537_p0)
}
  0xd0   : > { %415 = dma.vmem_to_hbm [thread:$0]  (%p815_p9), %s756_s21, 128, %s754_s28, %s296_s29  }
  0xd1 PF: > { %s324_s18 = sand.u32 1, %s575_s12   ;;  %p816_p7 = scmp.ne.s32.totalorder %s811_s27, 0 }
  0xd2   : > { %p817_p13 = scmp.ge.s32.totalorder %s595_s17, 2  ;;  %s325_s24 = scalar_lea.sflag [#allocation4], %s324_s18 }
  0xd4   : > { %p422_p3 = pnand %p817_p13, %p816_p7 }
  0xd6   : > { %570 = dma.done.wait (!%p422_p3), %s325_s24, 128  }
  0xd7   : > { %572 = vsyncadd (!%p422_p3), %s325_s24, 4294967168  ;;  %s19_s17 = sadd.s32 1, %s595_s17   ;;  %s818_s12 = smov %s579_s13 }
  0xd8   : > { %p16_p6 = scmp.ge.s32.totalorder %s19_s17, 4   ;;  %s819_s13 = smov %s583_s14 }
  0xd9   : > { %s820_s14 = smov %s677_s26  ;;  %s821_s15 = smov %s591_s16 }
  0xda   : > { %s822_s16 = smov %s824_s20  ;;  %18 = sbr.rel (!%p16_p6) target bundleno = 6 (0x6), region = 77 }
  0xe1   :  { %330 = vsyncpa [#allocation3], 1 }
  0xe2   :  { %332 = vsyncpa [#allocation3 + $0x1], 1 }
  0xe3   :  { %333 = vsyncpa [#allocation4], 1 }
  0xe4   :  { %335 = vsyncpa [#allocation4 + $0x1], 1 }

</bundles_post_ra>
